<compile_context>
chip_gen: v5e
topology: v5e:2x2
jax: 0.10.0
libtpu: 0.0.40
codegen_flags: <defaults>
</compile_context>

<pallas_src>
import functools

import jax
import jax.numpy as jnp
from jax.experimental import pallas as pl
from jax.experimental.pallas import tpu as pltpu

TEMPERATURE_ARCH = {1: [1], 2: [1, 99], 4: [1, 2, 4, 99],
                    6: [1, 2, 3, 4, 5, 99], 8: [1, 2, 3, 4, 5, 6, 7, 99]}


def make_mul_csra_kernel(t_list, lam, spatial, num_classes):
    """Builds the Pallas kernel body (T values / lam are compile-time constants)."""
    inv_s = 1.0 / float(spatial)
    lam = float(lam)
    K = num_classes

    def kernel(x_ref, w_ref, o_ref):
        # x_ref: (1, C, S)   w_ref: (num_head*K, C)  [rows already L2-normalized]
        # o_ref: (1, K, 1)
        x_b = x_ref[0]                                  # (C, S)
        w_all = w_ref[...]                              # (HK, C)

        # One fused MXU matmul for all heads: (HK, C) @ (C, S) -> (HK, S).
        scores = jnp.dot(w_all, x_b, preferred_element_type=jnp.float32)

        logit = jnp.zeros((K, 1), jnp.float32)
        for h, t in enumerate(t_list):                  # unrolled over heads (<= 8)
            s_h = scores[h * K:(h + 1) * K, :]          # (K, S) sublane-aligned slice

            base = jnp.sum(s_h, axis=1, keepdims=True) * inv_s      # (K, 1)
            if t == 99:
                att = jnp.max(s_h, axis=1, keepdims=True)           # (K, 1)
            else:
                st = s_h * float(t)
                m = jnp.max(st, axis=1, keepdims=True)
                e = jnp.exp(st - m)                                  # (K, S) -> EUP
                num = jnp.sum(s_h * e, axis=1, keepdims=True)        # (K, 1)
                den = jnp.sum(e, axis=1, keepdims=True)              # (K, 1)
                att = num * pl.reciprocal(den, approx=True)          # tiny, EUP slot

            logit = logit + base + lam * att

        o_ref[0] = logit.astype(o_ref.dtype)

    return kernel


@functools.partial(jax.jit, static_argnames=("t_list", "lam"))
def mul_csra_head(x_nchw, weights_khc, t_list, lam):
    """weights_khc: (num_head, K, C) — torch Conv2d weight layout (squeezed 1x1)."""
    B, C, H, W = x_nchw.shape
    S = H * W
    num_head, K, _ = weights_khc.shape
    assert len(t_list) == num_head

    # x: NCHW -> (B, C, S). Pure reshape (contiguous), no HBM transpose pass.
    x_bcs = x_nchw.reshape(B, C, S).astype(jnp.float32)

    # Pre-normalize the (tiny) weights once in the wrapper: w_hat = w / ||w||.
    w = weights_khc.astype(jnp.float32)                               # (H, K, C)
    norm = jnp.sqrt(jnp.sum(w * w, axis=2, keepdims=True))            # (H, K, 1)
    inv_norm = jnp.where(norm > 0, 1.0 / norm, 1.0)                   # guard all-zero rows
    w_fused = (w * inv_norm).reshape(num_head * K, C)                 # (HK, C)

    kernel = make_mul_csra_kernel(t_list, lam, S, K)

    out = pl.pallas_call(
        kernel,
        out_shape=jax.ShapeDtypeStruct((B, K, 1), jnp.float32),
        grid_spec=pltpu.PrefetchScalarGridSpec(
            num_scalar_prefetch=0,
            grid=(B,),
            in_specs=[
                pl.BlockSpec((1, C, S), lambda b: (b, 0, 0)),          # batch tile of x
                pl.BlockSpec((num_head * K, C), lambda b: (0, 0)),     # weights resident
            ],
            out_specs=pl.BlockSpec((1, K, 1), lambda b: (b, 0, 0)),
        ),
        compiler_params=pltpu.CompilerParams(
            dimension_semantics=("parallel",),                         # megacore on v7x
        ),
    )(x_bcs, w_fused)

    return out.reshape(B, K)


def mul_csra_reference(x_nchw, weights_khc, t_list, lam):
    """Pure-JAX reference mirroring the PyTorch module exactly (NCHW)."""
    B, C, H, W = x_nchw.shape
    K = weights_khc.shape[1]
    logit = jnp.zeros((B, K), jnp.float32)
    for h, t in enumerate(t_list):
        w = weights_khc[h]                                            # (K, C)
        score = jnp.einsum("bchw,kc->bkhw", x_nchw, w)                # 1x1 conv, no bias
        norm = jnp.sqrt(jnp.sum(w * w, axis=1))[None, :, None, None]  # ||W_k||
        score = (score / norm).reshape(B, K, H * W)
        base = jnp.mean(score, axis=2)
        if t == 99:
            att = jnp.max(score, axis=2)
        else:
            soft = jax.nn.softmax(score * float(t), axis=2)
            att = jnp.sum(score * soft, axis=2)
        logit = logit + base + float(lam) * att
    return logit


if __name__ == "__main__":
    # Small shapes consistent with the module (in_channels -> 32, num_classes=80 default).
    B, C, H, W = 2, 32, 8, 8
    num_classes = 80
    num_head = 2                     # -> temperatures [1, 99] (exercises both branches)
    lam = 0.1
    t_list = tuple(TEMPERATURE_ARCH[num_head])

    key = jax.random.PRNGKey(0)
    kx, kw = jax.random.split(key)
    x = jax.random.normal(kx, (B, C, H, W), dtype=jnp.float32)
    # Deterministic synthetic conv1x1 weights: (num_head, num_classes, in_channels)
    weights = 0.02 * jax.random.normal(kw, (num_head, num_classes, C), dtype=jnp.float32)

    out = mul_csra_head(x, weights, t_list, lam)
    out = jax.block_until_ready(out)

    ref = mul_csra_reference(x, weights, t_list, lam)
    assert out.shape == (B, num_classes), out.shape
    assert jnp.allclose(out, ref, rtol=1e-3, atol=1e-3), float(jnp.max(jnp.abs(out - ref)))

    print("KERNEL_OK")
</pallas_src>

<mosaic_0001>
module attributes {stable_mosaic.version = 11 : i64} {
  func.func @kernel(%arg0: i32, %arg1: memref<1x32x64xf32, #tpu.memory_space<vmem>>, %arg2: memref<160x32xf32, #tpu.memory_space<vmem>>, %arg3: memref<1x80x1xf32, #tpu.memory_space<vmem>>) attributes {dimension_semantics = [#tpu.dimension_semantics<parallel>], iteration_bounds = array<i64: 2>, scalar_prefetch = 0 : i64, scratch_operands = 0 : i64, tpu.core_type = #tpu.core_type<tc>, window_params = [{transform_indices = @transform_0, window_bounds = array<i64: 1, 32, 64>}, {pipeline_mode = #tpu.pipeline_mode<synchronous>, transform_indices = @transform_1, window_bounds = array<i64: 160, 32>}, {transform_indices = @transform_2, window_bounds = array<i64: 1, 80, 1>}]} {
    %c0 = arith.constant 0 : index
    %c0_0 = arith.constant 0 : index
    %c0_1 = arith.constant 0 : index
    %0 = vector.load %arg1[%c0, %c0_0, %c0_1] : memref<1x32x64xf32, #tpu.memory_space<vmem>>, vector<1x32x64xf32>
    %1 = vector.shape_cast %0 : vector<1x32x64xf32> to vector<32x64xf32>
    %c0_2 = arith.constant 0 : index
    %c0_3 = arith.constant 0 : index
    %2 = vector.load %arg2[%c0_2, %c0_3] : memref<160x32xf32, #tpu.memory_space<vmem>>, vector<160x32xf32>
    %cst = arith.constant dense<0.000000e+00> : vector<160x64xf32>
    %3 = tpu.matmul %2, %1, %cst {dimension_numbers = #tpu.dot_dimension_numbers<[1], [0], [0], [1], [0, 0, 1, 1], [], []>} : vector<160x32xf32>, vector<32x64xf32>, vector<160x64xf32> -> vector<160x64xf32>
    %cst_4 = arith.constant 0.000000e+00 : f32
    %4 = vector.broadcast %cst_4 : f32 to vector<80x1xf32>
    %5 = vector.extract_strided_slice %3 {offsets = [0, 0], sizes = [80, 64], strides = [1, 1]} : vector<160x64xf32> to vector<80x64xf32>
    %cst_5 = arith.constant dense<0.000000e+00> : vector<80xf32>
    %6 = vector.multi_reduction <add>, %5, %cst_5 [1] : vector<80x64xf32> to vector<80xf32>
    %7 = vector.shape_cast %6 : vector<80xf32> to vector<80x1xf32>
    %cst_6 = arith.constant 1.562500e-02 : f32
    %8 = vector.broadcast %cst_6 : f32 to vector<80x1xf32>
    %9 = arith.mulf %7, %8 : vector<80x1xf32>
    %cst_7 = arith.constant 1.000000e+00 : f32
    %10 = vector.broadcast %cst_7 : f32 to vector<80x64xf32>
    %11 = arith.mulf %5, %10 : vector<80x64xf32>
    %cst_8 = arith.constant dense<0xFF800000> : vector<80xf32>
    %12 = vector.multi_reduction <maximumf>, %11, %cst_8 [1] : vector<80x64xf32> to vector<80xf32>
    %13 = vector.shape_cast %12 : vector<80xf32> to vector<80x1xf32>
    %14 = vector.broadcast %13 : vector<80x1xf32> to vector<80x64xf32>
    %15 = arith.subf %11, %14 : vector<80x64xf32>
    %16 = math.exp %15 : vector<80x64xf32>
    %17 = arith.mulf %5, %16 : vector<80x64xf32>
    %cst_9 = arith.constant dense<0.000000e+00> : vector<80xf32>
    %18 = vector.multi_reduction <add>, %17, %cst_9 [1] : vector<80x64xf32> to vector<80xf32>
    %19 = vector.shape_cast %18 : vector<80xf32> to vector<80x1xf32>
    %cst_10 = arith.constant dense<0.000000e+00> : vector<80xf32>
    %20 = vector.multi_reduction <add>, %16, %cst_10 [1] : vector<80x64xf32> to vector<80xf32>
    %21 = vector.shape_cast %20 : vector<80xf32> to vector<80x1xf32>
    %22 = tpu.reciprocal %21 {approx = true} : vector<80x1xf32> -> vector<80x1xf32>
    %23 = arith.mulf %19, %22 : vector<80x1xf32>
    %24 = arith.addf %4, %9 : vector<80x1xf32>
    %cst_11 = arith.constant 1.000000e-01 : f32
    %25 = vector.broadcast %cst_11 : f32 to vector<80x1xf32>
    %26 = arith.mulf %25, %23 : vector<80x1xf32>
    %27 = arith.addf %24, %26 : vector<80x1xf32>
    %28 = vector.extract_strided_slice %3 {offsets = [80, 0], sizes = [80, 64], strides = [1, 1]} : vector<160x64xf32> to vector<80x64xf32>
    %cst_12 = arith.constant dense<0.000000e+00> : vector<80xf32>
    %29 = vector.multi_reduction <add>, %28, %cst_12 [1] : vector<80x64xf32> to vector<80xf32>
    %30 = vector.shape_cast %29 : vector<80xf32> to vector<80x1xf32>
    %cst_13 = arith.constant 1.562500e-02 : f32
    %31 = vector.broadcast %cst_13 : f32 to vector<80x1xf32>
    %32 = arith.mulf %30, %31 : vector<80x1xf32>
    %cst_14 = arith.constant dense<0xFF800000> : vector<80xf32>
    %33 = vector.multi_reduction <maximumf>, %28, %cst_14 [1] : vector<80x64xf32> to vector<80xf32>
    %34 = vector.shape_cast %33 : vector<80xf32> to vector<80x1xf32>
    %35 = arith.addf %27, %32 : vector<80x1xf32>
    %cst_15 = arith.constant 1.000000e-01 : f32
    %36 = vector.broadcast %cst_15 : f32 to vector<80x1xf32>
    %37 = arith.mulf %36, %34 : vector<80x1xf32>
    %38 = arith.addf %35, %37 : vector<80x1xf32>
    %c0_16 = arith.constant 0 : index
    %c0_17 = arith.constant 0 : index
    %c0_18 = arith.constant 0 : index
    %39 = vector.load %arg3[%c0_16, %c0_17, %c0_18] : memref<1x80x1xf32, #tpu.memory_space<vmem>>, vector<1x80x1xf32>
    %40 = vector.shape_cast %39 : vector<1x80x1xf32> to vector<80x1xf32>
    %41 = vector.shape_cast %38 : vector<80x1xf32> to vector<1x80x1xf32>
    tpu.vector_store %arg3[%c0_16, %c0_17, %c0_18], %41 {strides = array<i32>} : memref<1x80x1xf32, #tpu.memory_space<vmem>>, vector<1x80x1xf32>,
    return
  }
  func.func @transform_0(%arg0: i32) -> (i32, i32, i32) {
    %c0_i32 = arith.constant 0 : i32
    %c0_i32_0 = arith.constant 0 : i32
    %c0_i32_1 = arith.constant 0 : i32
    return %arg0, %c0_i32, %c0_i32_0 : i32, i32, i32
  }
  func.func @transform_1(%arg0: i32) -> (i32, i32) {
    %c0_i32 = arith.constant 0 : i32
    %c0_i32_0 = arith.constant 0 : i32
    %c0_i32_1 = arith.constant 0 : i32
    return %c0_i32, %c0_i32_0 : i32, i32
  }
  func.func @transform_2(%arg0: i32) -> (i32, i32, i32) {
    %c0_i32 = arith.constant 0 : i32
    %c0_i32_0 = arith.constant 0 : i32
    %c0_i32_1 = arith.constant 0 : i32
    return %arg0, %c0_i32, %c0_i32_0 : i32, i32, i32
  }
}

</mosaic_0001>

<bundles_post_ra>
// kernel: mul_csra_head.1
= control target key start
LH: loop header
LB: loop body
LE: loop exit
PB: predicated region body
PF: predicated region fallthrough
CT: control target
= control target key end

     0   :  { %s808_s9 = smov 0   ;;  %s1152_s0 = inlined_call_operand.vmem [shape: f32[2,32,64], index: 0, kind: input, shape index: {}]   ;;  %s1153_s1 = inlined_call_operand.vmem [shape: f32[160,32], index: 1, kind: input, shape index: {}]   ;;  %s1154_s2 = inlined_call_operand.vmem [shape: f32[2,80,1], index: 2, kind: output, shape index: {}]  }
   0x1 LB: > { %s693_s10 = sadd.s32 4294967295, %s791_s9   ;;  %p697_p0 = scmp.ge.s32.totalorder %s791_s9, 1  ;;  %s791_s9 = sphi %s808_s9, %s12_s9  }
   0x2   : > { %p112_p1 = scmp.lt.s32.totalorder %s791_s9, 3 }
   0x4   : > { %p113_p2 = pnand %p697_p0, %p112_p1 }
   0x5   : > { %p134_p3 = scmp.lt.s32.totalorder (!%p113_p2), %s693_s10, 1 }
   0x6   : > { %116 = sbr.rel (%p113_p2) target bundleno = 495 (0x1ef), region = 28 }
   0xb   : > { %s1156_s10 = smov (!%p134_p3, %s693_s10), 1  ;;  %v148_v4 = vld [vmem:[%s1153_s1] sm:$0xff]  ;;  %vm168_vm0 = vcmask 261120   ;;  %v153_v5 = vld [vmem:[%s1153_s1 + $0x28] sm:$0xff]  ;;  %v158_v6 = vld [vmem:[%s1153_s1 + $0x50] sm:$0xff]  ;;  %vm306_vm1 = vcmask 523264  }
   0xc   : > { %s723_s11 = sshll.u32 %s1156_s10, 5  ;;  %v163_v7 = vld [vmem:[%s1153_s1 + $0x78] sm:$0xff]  ;;  %v149_v8 = vld [vmem:[%s1153_s1 + $0x8] sm:$0xff]  ;;  %v154_v9 = vld [vmem:[%s1153_s1 + $0x30] sm:$0xff]  ;;  %s736_s29 = smul.u32 80, %s1156_s10  ;;  %vm627_vm2 = vcmask 7168  }
   0xd   : > { %s138_s14 = scalar_lea.vmem %s1152_s0, %s723_s11  ;;  %v159_v10 = vld [vmem:[%s1153_s1 + $0x58] sm:$0xff]  ;;  %v164_v11 = vld [vmem:[%s1153_s1 + $0x80] sm:$0xff]  ;;  %v150_v12 = vld [vmem:[%s1153_s1 + $0x10] sm:$0xff] }
   0xe   : > { %v147_v0 = vld [vmem:[%s138_s14 + $0x18] sm:$0xff]  ;;  %v146_v1 = vld [vmem:[%s138_s14 + $0x10] sm:$0xff]  ;;  %v145_v2 = vld [vmem:[%s138_s14 + $0x8] sm:$0xff]  ;;  %s1103_s4 = scalar_lea.vmem %s1154_s2, %s736_s29 }
   0xf   : > { %241 = vmatpush.msra.mxu0 %v147_v0  ;;  %724 = vmatpush.msra.mxu1 %v147_v0  ;;  %v144_v3 = vld [vmem:[%s138_s14] sm:$0xff]  ;;  %v155_v13 = vld [vmem:[%s1153_s1 + $0x38] sm:$0xff]  ;;  %v165_v14 = vld [vmem:[%s1153_s1 + $0x88] sm:$0xff] }
  0x10   : > { %725 = vmatpush.msra.mxu2 %v147_v0  ;;  %726 = vmatpush.msra.mxu3 %v147_v0  ;;  %v160_v15 = vld [vmem:[%s1153_s1 + $0x60] sm:$0xff]  ;;  %v151_v17 = vld [vmem:[%s1153_s1 + $0x18] sm:$0xff]  ;;  %v161_v18 = vld [vmem:[%s1153_s1 + $0x68] sm:$0xff] }
  0x11   : > { %242 = vmatpush.msra.mxu0 %v146_v1  ;;  %727 = vmatpush.msra.mxu1 %v146_v1  ;;  %v156_v16 = vld [vmem:[%s1153_s1 + $0x40] sm:$0xff]  ;;  %v166_v19 = vld [vmem:[%s1153_s1 + $0x90] sm:$0xff]  ;;  %v157_v21 = vld [vmem:[%s1153_s1 + $0x48] sm:$0xff] }
  0x12   : > { %728 = vmatpush.msra.mxu2 %v146_v1  ;;  %729 = vmatpush.msra.mxu3 %v146_v1  ;;  %v152_v20 = vld [vmem:[%s1153_s1 + $0x20] sm:$0xff]  ;;  %v162_v22 = vld [vmem:[%s1153_s1 + $0x70] sm:$0xff]  ;;  %v167_v23 = vld [vmem:[%s1153_s1 + $0x98] sm:$0xff] }
  0x13   : > { %243 = vmatpush.msra.mxu0 %v145_v2  ;;  %730 = vmatpush.msra.mxu1 %v145_v2 }
  0x14   : > { %731 = vmatpush.msra.mxu2 %v145_v2  ;;  %732 = vmatpush.msra.mxu3 %v145_v2 }
  0x15   : > { %244 = vmatpush.msra.mxu0 %v144_v3  ;;  %733 = vmatpush.msra.mxu1 %v144_v3 }
  0x16   : > { %701 = vmatmul.msk.f32.vlgmr.msra.gmra.mxu0 %vm168_vm0, %v148_v4  ;;  %706 = vmatmul.msk.f32.vlgmr.msra.gmra.mxu1 %vm168_vm0, %v153_v5 }
  0x17   : > { %734 = vmatpush.msra.mxu2 %v144_v3  ;;  %735 = vmatpush.msra.mxu3 %v144_v3 }
  0x18   : > { %711 = vmatmul.msk.f32.vlgmr.msra.gmra.mxu2 %vm168_vm0, %v158_v6  ;;  %716 = vmatmul.msk.f32.vlgmr.msra.gmra.mxu3 %vm168_vm0, %v163_v7 }
  0x1e   : > { %702 = vmatmul.msk.f32.gmra.mxu0 %vm168_vm0, %v149_v8  ;;  %707 = vmatmul.msk.f32.gmra.mxu1 %vm168_vm0, %v154_v9 }
  0x20   : > { %712 = vmatmul.msk.f32.gmra.mxu2 %vm168_vm0, %v159_v10  ;;  %717 = vmatmul.msk.f32.gmra.mxu3 %vm168_vm0, %v164_v11 }
  0x26   : > { %703 = vmatmul.msk.f32.gmra.mxu0 %vm168_vm0, %v150_v12  ;;  %708 = vmatmul.msk.f32.gmra.mxu1 %vm168_vm0, %v155_v13 }
  0x28   : > { %718 = vmatmul.msk.f32.gmra.mxu3 %vm168_vm0, %v165_v14  ;;  %713 = vmatmul.msk.f32.gmra.mxu2 %vm168_vm0, %v160_v15 }
  0x2e   : > { %709 = vmatmul.msk.f32.gmra.mxu1 %vm168_vm0, %v156_v16  ;;  %704 = vmatmul.msk.f32.gmra.mxu0 %vm168_vm0, %v151_v17 }
  0x30   : > { %714 = vmatmul.msk.f32.gmra.mxu2 %vm168_vm0, %v161_v18  ;;  %719 = vmatmul.msk.f32.gmra.mxu3 %vm168_vm0, %v166_v19 }
  0x36   : > { %705 = vmatmul.msk.f32.gmra.mxu0 %vm168_vm0, %v152_v20  ;;  %710 = vmatmul.msk.f32.gmra.mxu1 %vm168_vm0, %v157_v21 }
  0x38   : > { %715 = vmatmul.msk.f32.gmra.mxu2 %vm168_vm0, %v162_v22  ;;  %720 = vmatmul.msk.f32.gmra.mxu3 %vm168_vm0, %v167_v23 }
  0x93   : > { %v902_v24 = vpop.f32.mrf.mxu0  ;;  %v904_v25 = vpop.f32.mrf.mxu1 }
  0x94   : > { %v322_v26 = vsel %vm306_vm1, %v904_v25, 0.0  ;;  %v347_v27 = vsel %vm306_vm1, %v902_v24, -inf  ;;  %v307_v28 = vsel %vm306_vm1, %v902_v24, 0.0  ;;  %v362_v30 = vsel %vm306_vm1, %v904_v25, -inf }
  0x95   : > { %323 = vadd.xlane.f32.xlu2 %v322_v26  ;;  %348 = vmax.xlane.f32.xlu1 %v347_v27 }
  0x96   : > { %308 = vadd.xlane.f32.xlu0 %v307_v28 }
  0x9b   : > { %v276_v29 = vpop.f32.mrf.mxu2  ;;  %v916_v33 = vpop.f32.mrf.mxu3 }
  0x9c   : > { %v567_v31 = vsel %vm306_vm1, %v276_v29, -inf  ;;  %v527_v32 = vsel %vm306_vm1, %v276_v29, 0.0  ;;  %v918_v34 = vpop.f32.mrf.mxu0  ;;  %v920_v35 = vpop.f32.mrf.mxu1  ;;  %v542_v38 = vsel %vm306_vm1, %v916_v33, 0.0 }
  0x9d   : > { %568 = vmax.xlane.f32.xlu2 %v567_v31  ;;  %528 = vadd.xlane.f32.xlu1 %v527_v32  ;;  %v365_v36 = vsel %vm306_vm1, %v920_v35, -inf  ;;  %v350_v37 = vsel %vm306_vm1, %v918_v34, -inf  ;;  %v310_v43 = vsel %vm306_vm1, %v918_v34, 0.0  ;;  %v325_v48 = vsel %vm306_vm1, %v920_v35, 0.0 }
  0x9e   : > { %363 = vmax.xlane.f32.xlu0 %v362_v30 }
  0xa3   : > { %v279_v39 = vpop.f32.mrf.mxu2  ;;  %v928_v40 = vpop.f32.mrf.mxu3 }
  0xa4   : > { %v545_v41 = vsel %vm306_vm1, %v928_v40, 0.0  ;;  %v530_v42 = vsel %vm306_vm1, %v279_v39, 0.0  ;;  %v935_v44 = vpop.f32.mrf.mxu0  ;;  %v937_v45 = vpop.f32.mrf.mxu1  ;;  %v570_v52 = vsel %vm306_vm1, %v279_v39, -inf }
  0xa5   : > { %366 = vmax.xlane.f32.xlu1 %v365_v36  ;;  %351 = vmax.xlane.f32.xlu2 %v350_v37  ;;  %v368_v46 = vsel %vm306_vm1, %v937_v45, -inf  ;;  %v313_v47 = vsel %vm306_vm1, %v935_v44, 0.0  ;;  %v328_v51 = vsel %vm306_vm1, %v937_v45, 0.0  ;;  %v353_v57 = vsel %vm306_vm1, %v935_v44, -inf }
  0xa6   : > { %543 = vadd.xlane.f32.xlu0 %v542_v38 }
  0xab   : > { %v945_v49 = vpop.f32.mrf.mxu3  ;;  %v282_v53 = vpop.f32.mrf.mxu2 }
  0xac   : > { %v548_v50 = vsel %vm306_vm1, %v945_v49, 0.0  ;;  %v952_v54 = vpop.f32.mrf.mxu1  ;;  %v573_v56 = vsel %vm306_vm1, %v282_v53, -inf  ;;  %v959_v58 = vpop.f32.mrf.mxu0  ;;  %v533_v62 = vsel %vm306_vm1, %v282_v53, 0.0 }
  0xad   : > { %546 = vadd.xlane.f32.xlu1 %v545_v41  ;;  %531 = vadd.xlane.f32.xlu2 %v530_v42  ;;  %v331_v55 = vsel %vm306_vm1, %v952_v54, 0.0  ;;  %v316_v61 = vsel %vm306_vm1, %v959_v58, 0.0  ;;  %v356_v1 = vsel %vm306_vm1, %v959_v58, -inf  ;;  %v371_v2 = vsel %vm306_vm1, %v952_v54, -inf }
  0xae   : > { %311 = vadd.xlane.f32.xlu0 %v310_v43 }
  0xb3   : > { %v285_v59 = vpop.f32.mrf.mxu2  ;;  %v973_v3 = vpop.f32.mrf.mxu3 }
  0xb4   : > { %v576_v60 = vsel %vm306_vm1, %v285_v59, -inf  ;;  %v965_v63 = vpop.f32.mrf.mxu0  ;;  %v551_v5 = vsel %vm306_vm1, %v973_v3, 0.0  ;;  %v536_v6 = vsel %vm306_vm1, %v285_v59, 0.0  ;;  %v980_v7 = vpop.f32.mrf.mxu1 }
  0xb5   : > { %369 = vmax.xlane.f32.xlu2 %v368_v46  ;;  %314 = vadd.xlane.f32.xlu1 %v313_v47  ;;  %v319_v0 = vsel %vm306_vm1, %v965_v63, 0.0  ;;  %v359_v4 = vsel %vm306_vm1, %v965_v63, -inf  ;;  %v374_v8 = vsel %vm306_vm1, %v980_v7, -inf  ;;  %v334_v9 = vsel %vm306_vm1, %v980_v7, 0.0 }
  0xb6   : > { %326 = vadd.xlane.f32.xlu0 %v325_v48 }
  0xbb   : > { %v288_v10 = vpop.f32.mrf.mxu2  ;;  %v988_v13 = vpop.f32.mrf.mxu3 }
  0xbc   : > { %v579_v11 = vsel %vm306_vm1, %v288_v10, -inf  ;;  %v539_v12 = vsel %vm306_vm1, %v288_v10, 0.0  ;;  %v554_v14 = vsel %vm306_vm1, %v988_v13, 0.0 }
  0xbd   : > { %549 = vadd.xlane.f32.xlu2 %v548_v50  ;;  %329 = vadd.xlane.f32.xlu1 %v328_v51 }
  0xbe   : > { %571 = vmax.xlane.f32.xlu0 %v570_v52 }
  0xc5   : > { %332 = vadd.xlane.f32.xlu2 %v331_v55  ;;  %574 = vmax.xlane.f32.xlu1 %v573_v56 }
  0xc6   : > { %354 = vmax.xlane.f32.xlu0 %v353_v57 }
  0xcd   : > { %577 = vmax.xlane.f32.xlu2 %v576_v60  ;;  %317 = vadd.xlane.f32.xlu1 %v316_v61 }
  0xce   : > { %534 = vadd.xlane.f32.xlu0 %v533_v62 }
  0xd5   : > { %357 = vmax.xlane.f32.xlu1 %v356_v1  ;;  %320 = vadd.xlane.f32.xlu2 %v319_v0 }
  0xd6   : > { %372 = vmax.xlane.f32.xlu0 %v371_v2 }
  0xdd   : > { %537 = vadd.xlane.f32.xlu1 %v536_v6  ;;  %360 = vmax.xlane.f32.xlu2 %v359_v4 }
  0xde   : > { %552 = vadd.xlane.f32.xlu0 %v551_v5 }
  0xe5   : > { %375 = vmax.xlane.f32.xlu1 %v374_v8  ;;  %540 = vadd.xlane.f32.xlu2 %v539_v12 }
  0xe6   : > { %335 = vadd.xlane.f32.xlu0 %v334_v9 }
  0xed   : > { %555 = vadd.xlane.f32.xlu1 %v554_v14 }
  0xee   : > { %580 = vmax.xlane.f32.xlu0 %v579_v11 }
 0x108   : > { %v992_v15 = vpop.xlane.xlu2 %323  ;;  %v349_v16 = vpop.xlane.xlu1 %348 }
 0x109   : > { %v377_v17 = vsub.f32 %v902_v24, %v349_v16  ;;  %v995_v18 = vpop.xlane.xlu0 %308 }
 0x10b   : > { %v387_v19 = vmul.f32 1.442695, %v377_v17 }
 0x10d   : > { %745 = vpow2.f32 %v387_v19 }
 0x110   : > { %v997_v20 = vpop.xlane.xlu2 %568  ;;  %v999_v21 = vpop.xlane.xlu1 %528 }
 0x111   : > { %v364_v22 = vpop.xlane.xlu0 %363 }
 0x112   : > { %v382_v23 = vsub.f32 %v904_v25, %v364_v22 }
 0x113   : > { %v746_v26 = vpop.eup %745 }
 0x114   : > { %v397_v27 = vmul.f32 1.442695, %v382_v23  ;;  %v447_v28 = vsel %vm306_vm1, %v746_v26, 0.0  ;;  %v407_v50 = vmul.f32 %v746_v26, %v902_v24 }
 0x115   : > { %448 = vadd.xlane.f32.xlu0 %v447_v28 }
 0x116   : > { %747 = vpow2.f32 %v397_v27 }
 0x118   : > { %v367_v29 = vpop.xlane.xlu1 %366  ;;  %v352_v30 = vpop.xlane.xlu2 %351 }
 0x119   : > { %v383_v31 = vsub.f32 %v920_v35, %v367_v29  ;;  %v1004_v32 = vpop.xlane.xlu0 %543  ;;  %v378_v36 = vsub.f32 %v918_v34, %v352_v30 }
 0x11b   : > { %v399_v37 = vmul.f32 1.442695, %v383_v31  ;;  %v389_v38 = vmul.f32 1.442695, %v378_v36 }
 0x11c   : > { %v748_v39 = vpop.eup %747 }
 0x11d   : > { %749 = vpow2.f32 %v399_v37  ;;  %v462_v41 = vsel %vm306_vm1, %v748_v39, 0.0  ;;  %v412_v42 = vmul.f32 %v748_v39, %v904_v25  ;;  %v417_v25 = vsel %vm306_vm1, %v407_v50, 0.0 }
 0x11e   : > { %751 = vpow2.f32 %v389_v38  ;;  %463 = vadd.xlane.f32.xlu2 %v462_v41 }
 0x11f   : > { %v432_v43 = vsel %vm306_vm1, %v412_v42, 0.0 }
 0x120   : > { %433 = vadd.xlane.f32.xlu1 %v432_v43  ;;  %v1010_v46 = vpop.xlane.xlu1 %546  ;;  %v1012_v47 = vpop.xlane.xlu2 %531 }
 0x121   : > { %v1014_v48 = vpop.xlane.xlu0 %311 }
 0x123   : > { %v750_v51 = vpop.eup %749 }
 0x124   : > { %v752_v52 = vpop.eup %751  ;;  %v465_v53 = vsel %vm306_vm1, %v750_v51, 0.0  ;;  %v413_v24 = vmul.f32 %v750_v51, %v920_v35 }
 0x125   : > { %466 = vadd.xlane.f32.xlu0 %v465_v53  ;;  %v450_v55 = vsel %vm306_vm1, %v752_v52, 0.0  ;;  %v408_v59 = vmul.f32 %v752_v52, %v918_v34 }
 0x126   : > { %418 = vadd.xlane.f32.xlu2 %v417_v25  ;;  %v435_v1 = vsel %vm306_vm1, %v413_v24, 0.0 }
 0x127   : > { %v420_v0 = vsel %vm306_vm1, %v408_v59, 0.0 }
 0x128   : > { %451 = vadd.xlane.f32.xlu1 %v450_v55  ;;  %v370_v56 = vpop.xlane.xlu2 %369  ;;  %v1020_v57 = vpop.xlane.xlu1 %314 }
 0x129   : > { %v384_v60 = vsub.f32 %v937_v45, %v370_v56  ;;  %v1024_v61 = vpop.xlane.xlu0 %326 }
 0x12b   : > { %v401_v62 = vmul.f32 1.442695, %v384_v60 }
 0x12d   : > { %753 = vpow2.f32 %v401_v62  ;;  %421 = vadd.xlane.f32.xlu0 %v420_v0 }
 0x12e   : > { %436 = vadd.xlane.f32.xlu2 %v435_v1  ;;  %v585_v1 = vsel %vm306_vm1, %v928_v40, -inf }
 0x130   : > { %v1029_v2 = vpop.xlane.xlu2 %549  ;;  %v1031_v4 = vpop.xlane.xlu1 %329 }
 0x131   : > { %v1033_v5 = vpop.xlane.xlu0 %571 }
 0x133   : > { %v754_v34 = vpop.eup %753 }
 0x134   : > { %v468_v6 = vsel %vm306_vm1, %v754_v34, 0.0  ;;  %v414_v8 = vmul.f32 %v754_v34, %v937_v45 }
 0x135   : > { %469 = vadd.xlane.f32.xlu1 %v468_v6 }
 0x136   : > { %v438_v35 = vsel %vm306_vm1, %v414_v8, 0.0 }
 0x137   : > { %439 = vadd.xlane.f32.xlu0 %v438_v35 }
 0x138   : > { %v1038_v9 = vpop.xlane.xlu2 %332  ;;  %v1040_v10 = vpop.xlane.xlu1 %574 }
 0x139   : > { %v355_v11 = vpop.xlane.xlu0 %354 }
 0x13a   : > { %v379_v12 = vsub.f32 %v935_v44, %v355_v11  ;;  %v591_v11 = vsel %vm306_vm1, %v973_v3, -inf }
 0x13c   : > { %v391_v14 = vmul.f32 1.442695, %v379_v12 }
 0x13e   : > { %755 = vpow2.f32 %v391_v14 }
 0x140   : > { %v1043_v16 = vpop.xlane.xlu2 %577  ;;  %v1045_v17 = vpop.xlane.xlu1 %317 }
 0x141   : > { %v1047_v19 = vpop.xlane.xlu0 %534 }
 0x144   : > { %v756_v45 = vpop.eup %755 }
 0x145   : > { %v453_v22 = vsel %vm306_vm1, %v756_v45, 0.0  ;;  %v409_v23 = vmul.f32 %v756_v45, %v935_v44 }
 0x146   : > { %454 = vadd.xlane.f32.xlu2 %v453_v22 }
 0x147   : > { %v423_v26 = vsel %vm306_vm1, %v409_v23, 0.0 }
 0x148   : > { %424 = vadd.xlane.f32.xlu1 %v423_v26  ;;  %v358_v27 = vpop.xlane.xlu1 %357  ;;  %v1052_v28 = vpop.xlane.xlu2 %320 }
 0x149   : > { %v373_v29 = vpop.xlane.xlu0 %372  ;;  %v380_v30 = vsub.f32 %v959_v58, %v358_v27 }
 0x14a   : > { %v385_v31 = vsub.f32 %v952_v54, %v373_v29 }
 0x14b   : > { %v393_v36 = vmul.f32 1.442695, %v380_v30 }
 0x14c   : > { %v403_v37 = vmul.f32 1.442695, %v385_v31  ;;  %v342_v31 = vmul.f32 0.015625, %v992_v15 }
 0x14d   : > { %757 = vpow2.f32 %v393_v36 }
 0x14e   : > { %759 = vpow2.f32 %v403_v37 }
 0x150   : > { %v1056_v38 = vpop.xlane.xlu1 %537  ;;  %v361_v39 = vpop.xlane.xlu2 %360 }
 0x151   : > { %v381_v44 = vsub.f32 %v965_v63, %v361_v39  ;;  %v1078_v40 = vpop.xlane.xlu0 %552  ;;  %v337_v39 = vmul.f32 0.015625, %v995_v18 }
 0x153   : > { %v758_v41 = vpop.eup %757  ;;  %v395_v42 = vmul.f32 1.442695, %v381_v44 }
 0x154   : > { %v760_v43 = vpop.eup %759  ;;  %v456_v50 = vsel %vm306_vm1, %v758_v41, 0.0  ;;  %v410_v56 = vmul.f32 %v758_v41, %v959_v58  ;;  %v582_v58 = vsel %vm306_vm1, %v916_v33, -inf  ;;  %v588_v33 = vsel %vm306_vm1, %v945_v49, -inf }
 0x155   : > { %457 = vadd.xlane.f32.xlu0 %v456_v50  ;;  %v471_v51 = vsel %vm306_vm1, %v760_v43, 0.0  ;;  %v415_v52 = vmul.f32 %v760_v43, %v952_v54  ;;  %761 = vpow2.f32 %v395_v42  ;;  %v562_v41 = vmul.f32 0.015625, %v1004_v32 }
 0x156   : > { %472 = vadd.xlane.f32.xlu2 %v471_v51  ;;  %v426_v24 = vsel %vm306_vm1, %v410_v56, 0.0  ;;  %v557_v43 = vmul.f32 0.015625, %v999_v21 }
 0x157   : > { %v441_v53 = vsel %vm306_vm1, %v415_v52, 0.0 }
 0x158   : > { %442 = vadd.xlane.f32.xlu1 %v441_v53  ;;  %v376_v25 = vpop.xlane.xlu1 %375  ;;  %v1088_v14 = vpop.xlane.xlu2 %540  ;;  %v607_v53 = vmul.f32 0.1, %v997_v20 }
 0x159   : > { %v386_v55 = vsub.f32 %v980_v7, %v376_v25 }
 0x15b   : > { %v405_v59 = vmul.f32 1.442695, %v386_v55  ;;  %v762_v60 = vpop.eup %761 }
 0x15c   : > { %v459_v62 = vsel %vm306_vm1, %v762_v60, 0.0  ;;  %v411_v34 = vmul.f32 %v762_v60, %v965_v63  ;;  %v594_v63 = vsel %vm306_vm1, %v988_v13, -inf  ;;  %v338_v60 = vmul.f32 0.015625, %v1014_v48 }
 0x15d   : > { %763 = vpow2.f32 %v405_v59  ;;  %v343_v59 = vmul.f32 0.015625, %v1024_v61  ;;  %v344_v48 = vmul.f32 0.015625, %v1031_v4  ;;  %v609_v4 = vmul.f32 0.1, %v1040_v10 }
 0x15e   : > { %427 = vadd.xlane.f32.xlu2 %v426_v24  ;;  %v429_v8 = vsel %vm306_vm1, %v411_v34, 0.0  ;;  %v340_v10 = vmul.f32 0.015625, %v1045_v17 }
 0x160   : > { %460 = vadd.xlane.f32.xlu1 %v459_v62  ;;  %v1090_v45 = vpop.xlane.xlu1 %555  ;;  %v563_v62 = vmul.f32 0.015625, %v1010_v46  ;;  %v564_v46 = vmul.f32 0.015625, %v1029_v2 }
 0x163   : > { %v764_v54 = vpop.eup %763 }
 0x164   : > { %v474_v0 = vsel %vm306_vm1, %v764_v54, 0.0  ;;  %v416_v6 = vmul.f32 %v764_v54, %v980_v7  ;;  %v1084_v7 = vpop.xlane.xlu0 %335 }
 0x165   : > { %475 = vadd.xlane.f32.xlu0 %v474_v0  ;;  %v558_v0 = vmul.f32 0.015625, %v1012_v47 }
 0x166   : > { %586 = vmax.xlane.f32.xlu2 %v585_v1  ;;  %v444_v35 = vsel %vm306_vm1, %v416_v6, 0.0  ;;  %v608_v6 = vmul.f32 0.1, %v1033_v5 }
 0x168   : > { %583 = vmax.xlane.f32.xlu1 %v582_v58 }
 0x16c   : > { %v1086_v12 = vpop.xlane.xlu0 %580 }
 0x16d   : > { %430 = vadd.xlane.f32.xlu0 %v429_v8 }
 0x16e   : > { %445 = vadd.xlane.f32.xlu2 %v444_v35 }
 0x170   : > { %592 = vmax.xlane.f32.xlu1 %v591_v11 }
 0x175   : > { %589 = vmax.xlane.f32.xlu0 %v588_v33 }
 0x176   : > { %595 = vmax.xlane.f32.xlu2 %v594_v63 }
 0x188   : > { %v449_v3 = vpop.xlane.xlu0 %448 }
 0x191   : > { %v464_v22 = vpop.xlane.xlu2 %463 }
 0x192   : > { %765 = vrcp.f32 %v464_v22 }
 0x193   : > { %767 = vrcp.f32 %v449_v3  ;;  %v434_v23 = vpop.xlane.xlu1 %433 }
 0x198   : > { %v766_v49 = vpop.eup %765  ;;  %v467_v26 = vpop.xlane.xlu0 %466 }
 0x199   : > { %v768_v27 = vpop.eup %767  ;;  %v492_v13 = vmul.f32 %v766_v49, %v434_v23  ;;  %769 = vrcp.f32 %v467_v26  ;;  %v419_v29 = vpop.xlane.xlu2 %418  ;;  %v339_v26 = vmul.f32 0.015625, %v1020_v57 }
 0x19a   : > { %v487_v30 = vmul.f32 %v768_v27, %v419_v29 }
 0x19b   : > { %v512_v36 = vmul.f32 0.1, %v492_v13  ;;  %v452_v37 = vpop.xlane.xlu1 %451  ;;  %v559_v13 = vmul.f32 0.015625, %v1047_v19 }
 0x19c   : > { %v507_v44 = vmul.f32 0.1, %v487_v30  ;;  %771 = vrcp.f32 %v452_v37 }
 0x19d   : > { %v522_v42 = vadd.f32 %v512_v36, %v342_v31 }
 0x19e   : > { %v517_v50 = vadd.f32 %v507_v44, %v337_v39 }
 0x19f   : > { %v770_v51 = vpop.eup %769  ;;  %v1097_v52 = vadd.f32 %v562_v41, %v522_v42 }
 0x1a0   : > { %v597_v25 = vadd.f32 %v557_v43, %v517_v50  ;;  %v422_v15 = vpop.xlane.xlu0 %421  ;;  %v345_v43 = vmul.f32 0.015625, %v1038_v9 }
 0x1a1   : > { %v437_v18 = vpop.xlane.xlu2 %436 }
 0x1a2   : > { %v772_v32 = vpop.eup %771  ;;  %v617_v55 = vadd.f32 %v607_v53, %v597_v25  ;;  %v493_v56 = vmul.f32 %v770_v51, %v437_v18  ;;  %v565_v53 = vmul.f32 0.015625, %v1078_v40 }
 0x1a3   : > { %v488_v21 = vmul.f32 %v772_v32, %v422_v15  ;;  %v560_v15 = vmul.f32 0.015625, %v1056_v38 }
 0x1a4   : > { %628 = vst.msk [vmem:[%s1103_s4] sm:$0xff] %vm627_vm2, %v617_v55  ;;  %v513_v20 = vmul.f32 0.1, %v493_v56  ;;  %v610_v55 = vmul.f32 0.1, %v1043_v16 }
 0x1a5   : > { %v508_v24 = vmul.f32 0.1, %v488_v21 }
 0x1a6   : > { %v523_v54 = vadd.f32 %v513_v20, %v343_v59 }
 0x1a7   : > { %v518_v1 = vadd.f32 %v508_v24, %v338_v60 }
 0x1a8   : > { %v470_v58 = vpop.xlane.xlu1 %469  ;;  %v603_v34 = vadd.f32 %v563_v62, %v523_v54 }
 0x1a9   : > { %v598_v8 = vadd.f32 %v558_v0, %v518_v1  ;;  %773 = vrcp.f32 %v470_v58  ;;  %v341_v58 = vmul.f32 0.015625, %v1052_v28 }
 0x1aa   : > { %v440_v11 = vpop.xlane.xlu0 %439 }
 0x1ab   : > { %v618_v35 = vadd.f32 %v608_v6, %v598_v8 }
 0x1ad   : > { %629 = vst.msk [vmem:[%s1103_s4 + $0x8] sm:$0xff] %vm627_vm2, %v618_v35 }
 0x1af   : > { %v774_v61 = vpop.eup %773 }
 0x1b0   : > { %v494_v33 = vmul.f32 %v774_v61, %v440_v11 }
 0x1b2   : > { %v514_v63 = vmul.f32 0.1, %v494_v33  ;;  %v566_v33 = vmul.f32 0.015625, %v1090_v45 }
 0x1b4   : > { %v524_v3 = vadd.f32 %v514_v63, %v344_v48 }
 0x1b6   : > { %v1116_v47 = vadd.f32 %v564_v46, %v524_v3  ;;  %v611_v46 = vmul.f32 0.1, %v1086_v12 }
 0x1b9   : > { %v455_v22 = vpop.xlane.xlu2 %454 }
 0x1ba   : > { %775 = vrcp.f32 %v455_v22 }
 0x1bb   : > { %v425_v23 = vpop.xlane.xlu1 %424 }
 0x1c0   : > { %v776_v5 = vpop.eup %775 }
 0x1c1   : > { %v489_v49 = vmul.f32 %v776_v5, %v425_v23 }
 0x1c3   : > { %v509_v27 = vmul.f32 0.1, %v489_v49 }
 0x1c5   : > { %v519_v29 = vadd.f32 %v509_v27, %v339_v26 }
 0x1c7   : > { %v599_v30 = vadd.f32 %v559_v13, %v519_v29 }
 0x1c8   : > { %v458_v31 = vpop.xlane.xlu0 %457 }
 0x1c9   : > { %v619_v2 = vadd.f32 %v609_v4, %v599_v30  ;;  %777 = vrcp.f32 %v458_v31  ;;  %v473_v36 = vpop.xlane.xlu2 %472 }
 0x1ca   : > { %779 = vrcp.f32 %v473_v36 }
 0x1cb   : > { %630 = vst.msk [vmem:[%s1103_s4 + $0x10] sm:$0xff] %vm627_vm2, %v619_v2  ;;  %v443_v37 = vpop.xlane.xlu1 %442 }
 0x1cf   : > { %v778_v39 = vpop.eup %777 }
 0x1d0   : > { %v780_v44 = vpop.eup %779 }
 0x1d1   : > { %v495_v41 = vmul.f32 %v780_v44, %v443_v37  ;;  %v428_v42 = vpop.xlane.xlu2 %427 }
 0x1d2   : > { %v490_v57 = vmul.f32 %v778_v39, %v428_v42 }
 0x1d3   : > { %v515_v19 = vmul.f32 0.1, %v495_v41  ;;  %v461_v50 = vpop.xlane.xlu1 %460 }
 0x1d4   : > { %v510_v51 = vmul.f32 0.1, %v490_v57 }
 0x1d5   : > { %v525_v25 = vadd.f32 %v515_v19, %v345_v43 }
 0x1d6   : > { %v520_v18 = vadd.f32 %v510_v51, %v340_v10 }
 0x1d7   : > { %v605_v32 = vadd.f32 %v565_v53, %v525_v25 }
 0x1d8   : > { %v600_v56 = vadd.f32 %v560_v15, %v520_v18  ;;  %v476_v21 = vpop.xlane.xlu0 %475 }
 0x1d9   : > { %781 = vrcp.f32 %v476_v21  ;;  %v587_v9 = vpop.xlane.xlu2 %586 }
 0x1da   : > { %v620_v59 = vadd.f32 %v610_v55, %v600_v56  ;;  %783 = vrcp.f32 %v461_v50  ;;  %v613_v17 = vmul.f32 0.1, %v587_v9 }
 0x1db   : > { %v584_v20 = vpop.xlane.xlu1 %583 }
 0x1dc   : > { %631 = vst.msk [vmem:[%s1103_s4 + $0x18] sm:$0xff] %vm627_vm2, %v620_v59  ;;  %v623_v40 = vadd.f32 %v613_v17, %v603_v34  ;;  %v612_v60 = vmul.f32 0.1, %v584_v20  ;;  %v346_v34 = vmul.f32 0.015625, %v1084_v7 }
 0x1de   : > { %634 = vst.msk [vmem:[%s1103_s4 + $0x30] sm:$0xff] %vm627_vm2, %v623_v40  ;;  %v622_v38 = vadd.f32 %v612_v60, %v1097_v52  ;;  %v561_v52 = vmul.f32 0.015625, %v1088_v14 }
 0x1df   : > { %v782_v24 = vpop.eup %781 }
 0x1e0   : > { %v784_v62 = vpop.eup %783  ;;  %633 = vst.msk [vmem:[%s1103_s4 + $0x28] sm:$0xff] %vm627_vm2, %v622_v38  ;;  %v431_v16 = vpop.xlane.xlu0 %430 }
 0x1e1   : > { %v491_v54 = vmul.f32 %v784_v62, %v431_v16  ;;  %v446_v0 = vpop.xlane.xlu2 %445 }
 0x1e2   : > { %v496_v1 = vmul.f32 %v782_v24, %v446_v0 }
 0x1e3   : > { %v511_v6 = vmul.f32 0.1, %v491_v54  ;;  %v593_v8 = vpop.xlane.xlu1 %592 }
 0x1e4   : > { %v516_v35 = vmul.f32 0.1, %v496_v1  ;;  %v615_v61 = vmul.f32 0.1, %v593_v8 }
 0x1e5   : > { %v521_v11 = vadd.f32 %v511_v6, %v341_v58 }
 0x1e6   : > { %v526_v48 = vadd.f32 %v516_v35, %v346_v34  ;;  %v625_v63 = vadd.f32 %v615_v61, %v605_v32 }
 0x1e7   : > { %v601_v3 = vadd.f32 %v561_v52, %v521_v11 }
 0x1e8   : > { %636 = vst.msk [vmem:[%s1103_s4 + $0x40] sm:$0xff] %vm627_vm2, %v625_v63  ;;  %v590_v28 = vpop.xlane.xlu0 %589  ;;  %v606_v22 = vadd.f32 %v566_v33, %v526_v48 }
 0x1e9   : > { %v621_v7 = vadd.f32 %v611_v46, %v601_v3  ;;  %v614_v5 = vmul.f32 0.1, %v590_v28  ;;  %v596_v23 = vpop.xlane.xlu2 %595 }
 0x1ea   : > { %v616_v49 = vmul.f32 0.1, %v596_v23 }
 0x1eb   : > { %632 = vst.msk [vmem:[%s1103_s4 + $0x20] sm:$0xff] %vm627_vm2, %v621_v7  ;;  %v624_v14 = vadd.f32 %v614_v5, %v1116_v47 }
 0x1ec   : > { %v626_v26 = vadd.f32 %v616_v49, %v606_v22 }
 0x1ed   : > { %635 = vst.msk [vmem:[%s1103_s4 + $0x38] sm:$0xff] %vm627_vm2, %v624_v14 }
 0x1ee   : > { %637 = vst.msk [vmem:[%s1103_s4 + $0x48] sm:$0xff] %vm627_vm2, %v626_v26 }
 0x1ef PF: > { %s12_s9 = sadd.s32 1, %s791_s9  }
 0x1f0   : > { %p9_p4 = scmp.ge.s32.totalorder %s12_s9, 4  }
 0x1f2   :  { %11 = sbr.rel (!%p9_p4) target bundleno = 1 (0x1), region = 58 }

</bundles_post_ra>
